<compile_context>
chip_gen: v6e
topology: v6e:2x2x1
jax: 0.10.0
libtpu: 0.0.40
codegen_flags: <defaults>
</compile_context>

<pallas_src>
import functools
import math

import jax
import jax.numpy as jnp
from jax.experimental import pallas as pl
from jax.experimental.pallas import tpu as pltpu

_EPS = 1e-5


def _round_up(x, m):
    return ((x + m - 1) // m) * m


# ---------------------------------------------------------------------------
# Pallas kernel 1: tiled MXU matmul with fused bias / residual add / ReLU
#   out = act( (A @ B) + bias [+ identity] )
# BN scale already folded into B; A/B are bf16, accumulation f32.
# ---------------------------------------------------------------------------
def _fused_matmul_kernel(*refs, relu, has_residual):
    if has_residual:
        a_ref, b_ref, bias_ref, id_ref, o_ref, acc_ref = refs
    else:
        a_ref, b_ref, bias_ref, o_ref, acc_ref = refs
        id_ref = None

    @pl.when(pl.program_id(2) == 0)
    def _():
        acc_ref[...] = jnp.zeros_like(acc_ref)

    acc_ref[...] += jnp.dot(a_ref[...], b_ref[...],
                            preferred_element_type=jnp.float32)

    @pl.when(pl.program_id(2) == pl.num_programs(2) - 1)
    def _():
        y = acc_ref[...] + bias_ref[...]
        if has_residual:
            y = y + id_ref[...].astype(jnp.float32)
        if relu:
            y = jnp.maximum(y, 0.0)
        o_ref[...] = y.astype(o_ref.dtype)


def matmul_fused(a, w, bias, identity=None, *, relu, out_dtype=jnp.bfloat16):
    """a:(M,K) ; w:(Kp,Np) prepacked bf16 (scale folded, 128-padded) ;
    bias:(1,Np) f32 ; identity: optional (M, C<=Np).  Returns (Mp, Np)."""
    M, K = a.shape
    Kp, Np = w.shape

    a = a.astype(jnp.bfloat16)
    if K < Kp:
        a = jnp.pad(a, ((0, 0), (0, Kp - K)))

    # Right-size tm for tiny late-stage M; keep multiples of 16 (bf16 sublanes).
    tm = min(512, _round_up(M, 16))
    Mp = _round_up(M, tm)
    if Mp > M:
        a = jnp.pad(a, ((0, Mp - M), (0, 0)))

    tn = min(512, Np)
    # v7x megacore: try to keep >=2 parallel tiles so both TensorCores work.
    if (Mp // tm) * (Np // tn) < 2 and tn >= 256:
        tn //= 2
    # Largest tk <= 512 that divides the (128-padded) K.
    tk = next(c for c in (512, 384, 256, 128) if Kp % c == 0)

    inputs = [a, w, bias]
    in_specs = [
        pl.BlockSpec((tm, tk), lambda i, j, k: (i, k)),
        pl.BlockSpec((tk, tn), lambda i, j, k: (k, j)),
        pl.BlockSpec((1, tn), lambda i, j, k: (0, j)),
    ]
    has_res = identity is not None
    if has_res:
        idm = identity.astype(jnp.bfloat16)
        mi, ni = idm.shape
        if mi < Mp or ni < Np:
            idm = jnp.pad(idm, ((0, Mp - mi), (0, Np - ni)))
        inputs.append(idm)
        in_specs.append(pl.BlockSpec((tm, tn), lambda i, j, k: (i, j)))

    out = pl.pallas_call(
        functools.partial(_fused_matmul_kernel, relu=relu,
                          has_residual=has_res),
        out_shape=jax.ShapeDtypeStruct((Mp, Np), out_dtype),
        grid_spec=pltpu.PrefetchScalarGridSpec(
            num_scalar_prefetch=0,
            grid=(Mp // tm, Np // tn, Kp // tk),
            in_specs=in_specs,
            out_specs=pl.BlockSpec((tm, tn), lambda i, j, k: (i, j)),
            scratch_shapes=[pltpu.VMEM((tm, tn), jnp.float32)],
        ),
        compiler_params=pltpu.CompilerParams(
            dimension_semantics=("parallel", "parallel", "arbitrary")),
    )(*inputs)
    return out


# ---------------------------------------------------------------------------
# Pallas kernel 2: 9-way max reduction (MaxPool2d k=3, s=2, p=1), gridded.
# ---------------------------------------------------------------------------
def _max9_kernel(x_ref, o_ref):
    o_ref[...] = jnp.max(x_ref[...], axis=0)


def max_pool_3x3_s2(x):
    N, H, W, C = x.shape
    neg = float(jnp.finfo(x.dtype).min)
    xp = jnp.pad(x, ((0, 0), (1, 1), (1, 1), (0, 0)), constant_values=neg)
    OH = (H + 2 - 3) // 2 + 1
    OW = (W + 2 - 3) // 2 + 1
    patches = [xp[:, i:i + 2 * (OH - 1) + 1:2, j:j + 2 * (OW - 1) + 1:2, :]
               for i in range(3) for j in range(3)]
    M = N * OH * OW
    st = jnp.stack(patches, axis=0).reshape(9, M, C)

    tm = min(512, _round_up(M, 16))
    Mp = _round_up(M, tm)
    Cp = _round_up(C, 128)
    if Mp > M or Cp > C:
        st = jnp.pad(st, ((0, 0), (0, Mp - M), (0, Cp - C)),
                     constant_values=neg)

    out = pl.pallas_call(
        _max9_kernel,
        out_shape=jax.ShapeDtypeStruct((Mp, Cp), x.dtype),
        grid_spec=pltpu.PrefetchScalarGridSpec(
            num_scalar_prefetch=0,
            grid=(Mp // tm,),
            in_specs=[pl.BlockSpec((9, tm, Cp), lambda i: (0, i, 0))],
            out_specs=pl.BlockSpec((tm, Cp), lambda i: (i, 0)),
        ),
        compiler_params=pltpu.CompilerParams(
            dimension_semantics=("parallel",)),
    )(st)
    return out[:M, :C].reshape(N, OH, OW, C)


# ---------------------------------------------------------------------------
# Pallas kernel 3: global average pool (AdaptiveAvgPool2d((1,1))), gridded
# over channel tiles, f32 accumulation.
# ---------------------------------------------------------------------------
def _gap_kernel(x_ref, o_ref, *, inv_hw):
    o_ref[...] = jnp.sum(x_ref[...].astype(jnp.float32), axis=1) * inv_hw


def global_avg_pool(x):
    N, H, W, C = x.shape
    HW = H * W
    xr = x.reshape(N, HW, C)
    Npad = _round_up(N, 8)
    HWp = _round_up(HW, 16)
    Cp = _round_up(C, 128)
    xr = jnp.pad(xr, ((0, Npad - N), (0, HWp - HW), (0, Cp - C)))
    tc = min(512, Cp)

    out = pl.pallas_call(
        functools.partial(_gap_kernel, inv_hw=1.0 / float(HW)),
        out_shape=jax.ShapeDtypeStruct((Npad, Cp), jnp.float32),
        grid_spec=pltpu.PrefetchScalarGridSpec(
            num_scalar_prefetch=0,
            grid=(Cp // tc,),
            in_specs=[pl.BlockSpec((Npad, HWp, tc), lambda c: (0, 0, c))],
            out_specs=pl.BlockSpec((Npad, tc), lambda c: (0, c)),
        ),
        compiler_params=pltpu.CompilerParams(
            dimension_semantics=("parallel",)),
    )(xr)
    return out[:N, :C]


# ---------------------------------------------------------------------------
# Convolution wrapper: 1x1 convs go straight to the matmul (no im2col);
# kxk convs build patches with XLA glue, then one fused Pallas matmul.
# ---------------------------------------------------------------------------
def conv_apply(x, cp, *, stride, pad, relu, identity=None,
               out_dtype=jnp.bfloat16):
    N, H, W, Cin = x.shape
    kh, kw, cin, cout = cp['kh'], cp['kw'], cp['cin'], cp['cout']
    assert Cin == cin

    if kh == 1 and kw == 1:
        if stride > 1:
            x = x[:, ::stride, ::stride, :]
        OH, OW = x.shape[1], x.shape[2]
        patches = x.reshape(N * OH * OW, Cin)
    else:
        if pad:
            x = jnp.pad(x, ((0, 0), (pad, pad), (pad, pad), (0, 0)))
        Hp, Wp = x.shape[1], x.shape[2]
        OH = (Hp - kh) // stride + 1
        OW = (Wp - kw) // stride + 1
        cols = [x[:, i:i + stride * (OH - 1) + 1:stride,
                     j:j + stride * (OW - 1) + 1:stride, :]
                for i in range(kh) for j in range(kw)]
        patches = jnp.concatenate(cols, axis=-1).reshape(N * OH * OW,
                                                         kh * kw * Cin)

    idm = None
    if identity is not None:
        idm = identity.reshape(N * OH * OW, -1)

    out = matmul_fused(patches, cp['w'], cp['b'], identity=idm,
                       relu=relu, out_dtype=out_dtype)
    M = N * OH * OW
    if out.shape[0] != M or out.shape[1] != cout:
        out = out[:M, :cout]
    return out.reshape(N, OH, OW, cout)


# ---------------------------------------------------------------------------
# Parameter construction: synthetic weights with the same shapes as
# ResNet152.__init__, pre-packed for the kernels (BN scale folded into the
# transposed, 128-padded, bf16 weight matrix; bias kept f32).
# ---------------------------------------------------------------------------
class ParamFactory:
    def __init__(self, seed=0):
        self.key = jax.random.PRNGKey(seed)
        self.count = 0

    def _next_key(self):
        k = jax.random.fold_in(self.key, self.count)
        self.count += 1
        return k

    def conv(self, cout, cin, kh, kw):
        std = 0.1 / math.sqrt(cin * kh * kw)
        return jax.random.normal(self._next_key(), (cout, cin, kh, kw),
                                 jnp.float32) * std

    def vec(self, n, scale=0.05):
        return jax.random.normal(self._next_key(), (n,), jnp.float32) * scale

    def bn(self, c, conv_bias=None):
        # Inference-mode BatchNorm folded into per-channel scale/bias.
        gamma = 1.0 + self.vec(c, 0.05)
        beta = self.vec(c, 0.05)
        mean = self.vec(c, 0.05)
        var = 1.0 + 0.05 * jnp.abs(
            jax.random.normal(self._next_key(), (c,), jnp.float32))
        scale = gamma / jnp.sqrt(var + _EPS)
        if conv_bias is None:
            conv_bias = jnp.zeros((c,), jnp.float32)
        bias = (conv_bias - mean) * scale + beta
        return scale, bias

    def dense(self, cout, cin):
        w = jax.random.normal(self._next_key(), (cout, cin),
                              jnp.float32) * (0.1 / math.sqrt(cin))
        b = self.vec(cout, 0.05)
        return w, b


def _prep_conv(w, scale, bias):
    cout, cin, kh, kw = w.shape
    wmat = jnp.transpose(w, (2, 3, 1, 0)).reshape(kh * kw * cin, cout)
    wmat = wmat * scale[None, :]                      # fold BN scale offline
    K, N = wmat.shape
    Kp, Np = _round_up(K, 128), _round_up(N, 128)
    wmat = jnp.pad(wmat, ((0, Kp - K), (0, Np - N))).astype(jnp.bfloat16)
    b = jnp.pad(bias, (0, Np - N)).reshape(1, Np).astype(jnp.float32)
    return {'w': wmat, 'b': b, 'kh': kh, 'kw': kw, 'cin': cin, 'cout': cout}


def _prep_fc(w, b):
    cout, cin = w.shape
    Kp, Np = _round_up(cin, 128), _round_up(cout, 128)
    wmat = jnp.pad(w.T, ((0, Kp - cin), (0, Np - cout))).astype(jnp.bfloat16)
    bias = jnp.pad(b, (0, Np - cout)).reshape(1, Np).astype(jnp.float32)
    return {'w': wmat, 'b': bias, 'cout': cout}


def make_resnet152_params(num_channel=21, class_count=2, seed=0):
    pf = ParamFactory(seed)
    params = {}

    # first_conv: Conv2d(num_channel, 3, k=3, pad=1, bias=True) + BatchNorm2d(3)
    w = pf.conv(3, num_channel, 3, 3)
    conv_bias = pf.vec(3)
    s, b = pf.bn(3, conv_bias=conv_bias)
    params['first_conv'] = _prep_conv(w, s, b)

    # resnet stem: conv1 7x7 stride 2 pad 3 (3->64, bias=False) + bn1
    w = pf.conv(64, 3, 7, 7)
    s, b = pf.bn(64)
    params['stem'] = _prep_conv(w, s, b)

    # Bottleneck layers: ResNet-152 = [3, 8, 36, 3], expansion 4
    layers_cfg = [(64, 3, 1), (128, 8, 2), (256, 36, 2), (512, 3, 2)]
    expansion = 4
    inplanes = 64
    layers = []
    for planes, nblocks, stride in layers_cfg:
        blocks = []
        for bidx in range(nblocks):
            st = stride if bidx == 0 else 1
            blk = {'stride': st}
            blk['conv1'] = _prep_conv(pf.conv(planes, inplanes, 1, 1),
                                      *pf.bn(planes))
            blk['conv2'] = _prep_conv(pf.conv(planes, planes, 3, 3),
                                      *pf.bn(planes))
            blk['conv3'] = _prep_conv(pf.conv(planes * expansion, planes, 1, 1),
                                      *pf.bn(planes * expansion))
            if st != 1 or inplanes != planes * expansion:
                blk['downsample'] = _prep_conv(
                    pf.conv(planes * expansion, inplanes, 1, 1),
                    *pf.bn(planes * expansion))
            else:
                blk['downsample'] = None
            inplanes = planes * expansion
            blocks.append(blk)
        layers.append(blocks)
    params['layers'] = layers

    # fc: Linear(2048, class_count)
    params['fc'] = _prep_fc(*pf.dense(class_count, 512 * expansion))
    return params


# ---------------------------------------------------------------------------
# Forward pass (matches PyTorch ResNet152.forward semantics, inference mode)
# ---------------------------------------------------------------------------
def bottleneck_forward(x, blk):
    stride = blk['stride']
    out = conv_apply(x, blk['conv1'], stride=1, pad=0, relu=True)
    out = conv_apply(out, blk['conv2'], stride=stride, pad=1, relu=True)

    if blk['downsample'] is not None:
        identity = conv_apply(x, blk['downsample'], stride=stride, pad=0,
                              relu=False)
    else:
        identity = x

    # conv3 with residual add + ReLU fused into the matmul epilogue.
    out = conv_apply(out, blk['conv3'], stride=1, pad=0, relu=True,
                     identity=identity)
    return out


def resnet152_forward(params, x_nchw):
    # x_nchw: (N, num_channel, H, W)  -- PyTorch NCHW input convention.
    x = jnp.transpose(x_nchw, (0, 2, 3, 1)).astype(jnp.bfloat16)  # -> NHWC

    # first_conv: conv3x3 + BN (no ReLU)
    x = conv_apply(x, params['first_conv'], stride=1, pad=1, relu=False)

    # resnet stem: conv7x7/2 + BN + ReLU, then MaxPool 3x3/2
    x = conv_apply(x, params['stem'], stride=2, pad=3, relu=True)
    x = max_pool_3x3_s2(x)

    # layer1..layer4
    for blocks in params['layers']:
        for blk in blocks:
            x = bottleneck_forward(x, blk)

    # AdaptiveAvgPool2d((1,1)) + flatten + fc
    pooled = global_avg_pool(x)                                  # (N, 2048) f32
    fc = params['fc']
    logits = matmul_fused(pooled, fc['w'], fc['b'], relu=False,
                          out_dtype=jnp.float32)
    logits = logits[:pooled.shape[0], :fc['cout']]
    return logits                                                # (N, classes)


# ---------------------------------------------------------------------------
if __name__ == "__main__":
    num_channel = 21
    class_count = 2
    batch, spatial = 2, 32   # small spatial size; survives all 5 stride-2 stages

    params = make_resnet152_params(num_channel=num_channel,
                                   class_count=class_count, seed=0)

    key = jax.random.PRNGKey(0)
    x = jax.random.normal(key, (batch, num_channel, spatial, spatial),
                          jnp.float32)

    logits = resnet152_forward(params, x)
    logits = jax.block_until_ready(logits)
    assert logits.shape == (batch, class_count), logits.shape
    print("KERNEL_OK")
</pallas_src>

<mosaic_0001>
module attributes {stable_mosaic.version = 11 : i64} {
  func.func @_fused_matmul_kernel(%arg0: i32, %arg1: i32, %arg2: i32, %arg3: memref<512x256xbf16, #tpu.memory_space<vmem>>, %arg4: memref<256x128xbf16, #tpu.memory_space<vmem>>, %arg5: memref<1x128xf32, #tpu.memory_space<vmem>>, %arg6: memref<512x128xbf16, #tpu.memory_space<vmem>>, %arg7: memref<512x128xf32, #tpu.memory_space<vmem>>) attributes {dimension_semantics = [#tpu.dimension_semantics<parallel>, #tpu.dimension_semantics<parallel>, #tpu.dimension_semantics<arbitrary>], iteration_bounds = array<i64: 4, 1, 1>, scalar_prefetch = 0 : i64, scratch_operands = 1 : i64, tpu.core_type = #tpu.core_type<tc>, window_params = [{transform_indices = @transform_0, window_bounds = array<i64: 512, 256>}, {transform_indices = @transform_1, window_bounds = array<i64: 256, 128>}, {transform_indices = @transform_2, window_bounds = array<i64: 1, 128>}, {transform_indices = @transform_3, window_bounds = array<i64: 512, 128>}]} {
    %c0_i32 = arith.constant 0 : i32
    %0 = arith.cmpi eq, %arg2, %c0_i32 : i32
    %1 = arith.extui %0 : i1 to i32
    %c0_i32_0 = arith.constant 0 : i32
    %2 = arith.cmpi ne, %1, %c0_i32_0 : i32
    scf.if %2 {
      %cst_10 = arith.constant 0.000000e+00 : f32
      %12 = vector.broadcast %cst_10 : f32 to vector<512x128xf32>
      %c0_11 = arith.constant 0 : index
      %c0_12 = arith.constant 0 : index
      %13 = vector.load %arg7[%c0_11, %c0_12] : memref<512x128xf32, #tpu.memory_space<vmem>>, vector<512x128xf32>
      tpu.vector_store %arg7[%c0_11, %c0_12], %12 {strides = array<i32>} : memref<512x128xf32, #tpu.memory_space<vmem>>, vector<512x128xf32>,
    } else {
    }
    %c0 = arith.constant 0 : index
    %c0_1 = arith.constant 0 : index
    %3 = vector.load %arg7[%c0, %c0_1] : memref<512x128xf32, #tpu.memory_space<vmem>>, vector<512x128xf32>
    %c0_2 = arith.constant 0 : index
    %c0_3 = arith.constant 0 : index
    %4 = vector.load %arg3[%c0_2, %c0_3] : memref<512x256xbf16, #tpu.memory_space<vmem>>, vector<512x256xbf16>
    %c0_4 = arith.constant 0 : index
    %c0_5 = arith.constant 0 : index
    %5 = vector.load %arg4[%c0_4, %c0_5] : memref<256x128xbf16, #tpu.memory_space<vmem>>, vector<256x128xbf16>
    %cst = arith.constant dense<0.000000e+00> : vector<512x128xf32>
    %6 = tpu.matmul %4, %5, %cst {dimension_numbers = #tpu.dot_dimension_numbers<[1], [0], [0], [1], [0, 0, 1, 1], [], []>} : vector<512x256xbf16>, vector<256x128xbf16>, vector<512x128xf32> -> vector<512x128xf32>
    %7 = arith.addf %3, %6 : vector<512x128xf32>
    %c0_6 = arith.constant 0 : index
    %c0_7 = arith.constant 0 : index
    %8 = vector.load %arg7[%c0_6, %c0_7] : memref<512x128xf32, #tpu.memory_space<vmem>>, vector<512x128xf32>
    tpu.vector_store %arg7[%c0_6, %c0_7], %7 {strides = array<i32>} : memref<512x128xf32, #tpu.memory_space<vmem>>, vector<512x128xf32>,
    %c0_i32_8 = arith.constant 0 : i32
    %9 = arith.cmpi eq, %arg2, %c0_i32_8 : i32
    %10 = arith.extui %9 : i1 to i32
    %c0_i32_9 = arith.constant 0 : i32
    %11 = arith.cmpi ne, %10, %c0_i32_9 : i32
    scf.if %11 {
      %c0_10 = arith.constant 0 : index
      %c0_11 = arith.constant 0 : index
      %12 = vector.load %arg7[%c0_10, %c0_11] : memref<512x128xf32, #tpu.memory_space<vmem>>, vector<512x128xf32>
      %c0_12 = arith.constant 0 : index
      %c0_13 = arith.constant 0 : index
      %13 = vector.load %arg5[%c0_12, %c0_13] : memref<1x128xf32, #tpu.memory_space<vmem>>, vector<1x128xf32>
      %14 = vector.broadcast %13 : vector<1x128xf32> to vector<512x128xf32>
      %15 = arith.addf %12, %14 : vector<512x128xf32>
      %16 = arith.truncf %15 : vector<512x128xf32> to vector<512x128xbf16>
      %c0_14 = arith.constant 0 : index
      %c0_15 = arith.constant 0 : index
      %17 = vector.load %arg6[%c0_14, %c0_15] : memref<512x128xbf16, #tpu.memory_space<vmem>>, vector<512x128xbf16>
      tpu.vector_store %arg6[%c0_14, %c0_15], %16 {strides = array<i32>} : memref<512x128xbf16, #tpu.memory_space<vmem>>, vector<512x128xbf16>,
    } else {
    }
    return
  }
  func.func @transform_0(%arg0: i32, %arg1: i32, %arg2: i32) -> (i32, i32) {
    %c0_i32 = arith.constant 0 : i32
    return %arg0, %arg2 : i32, i32
  }
  func.func @transform_1(%arg0: i32, %arg1: i32, %arg2: i32) -> (i32, i32) {
    %c0_i32 = arith.constant 0 : i32
    return %arg2, %arg1 : i32, i32
  }
  func.func @transform_2(%arg0: i32, %arg1: i32, %arg2: i32) -> (i32, i32) {
    %c0_i32 = arith.constant 0 : i32
    %c0_i32_0 = arith.constant 0 : i32
    return %c0_i32, %arg1 : i32, i32
  }
  func.func @transform_3(%arg0: i32, %arg1: i32, %arg2: i32) -> (i32, i32) {
    %c0_i32 = arith.constant 0 : i32
    return %arg0, %arg1 : i32, i32
  }
}

</mosaic_0001>

<bundles_post_ra>
// kernel: tpu_custom_call.1
= control target key start
LH: loop header
LB: loop body
LE: loop exit
PB: predicated region body
PF: predicated region fallthrough
CT: control target
= control target key end

     0   :  { %8 = vsyncpa [#allocation4], 0  ;;  %s3107_s0 = inlined_call_operand.hbm [shape: bf16[2048,256], index: 0, kind: input, shape index: {}]   ;;  %s3108_s1 = inlined_call_operand.hbm [shape: bf16[256,128], index: 1, kind: input, shape index: {}]   ;;  %s3109_s2 = inlined_call_operand.vmem [shape: f32[1,128], index: 2, kind: input, shape index: {}]   ;;  %s3110_s3 = inlined_call_operand.hbm [shape: bf16[2048,128], index: 3, kind: output, shape index: {}]  }
   0x1   :  { %10 = vsyncpa [#allocation4 + $0x1], 0 }
   0x2   :  { %11 = vsyncpa [#allocation7], 0 }
   0x3   :  { %12 = vsyncpa [#allocation5], 0 }
   0x4   :  { %14 = vsyncpa [#allocation5 + $0x1], 0  ;;  %s2725_s12 = smov 0   ;;  %s2727_s13 = smov 0  }
   0x5   :  { %s2729_s14 = smov 0   ;;  %s2731_s15 = smov 0  }
   0x6   :  { %s2733_s16 = smov 0   ;;  %s2735_s17 = smov 0  }
   0x7 LB: > { %s1909_s18 = sadd.s32 4294967295, %s2693_s17   ;;  %s1910_s19 = sadd.s32 4294967294, %s2693_s17   ;;  %s2693_s17 = sphi %s2735_s17, %s20_s17   ;;  %s2689_s16 = sphi %s2733_s16, %s3127_s16   ;;  %s2685_s15 = sphi %s2731_s15, %s3126_s15   ;;  %s2681_s14 = sphi %s2729_s14, %s3125_s14   ;;  %s2677_s13 = sphi %s2727_s13, %s3124_s13   ;;  %s2673_s12 = sphi %s2725_s12, %s3123_s12  }
   0x8   : > { %p61_p0 = scmp.ne.s32.totalorder %s2677_s13, %s2673_s12  ;;  %p2759_p1 = scmp.eq.s32.totalorder %s1909_s18, 0 }
   0x9   : > { %p2763_p2 = scmp.eq.s32.totalorder %s1909_s18, 3  ;;  %p147_p3 = scmp.eq.s32.totalorder %s1910_s19, 3 }
   0xa   : > { %p2769_p4 = por %p2759_p1, %p61_p0  ;;  %p1911_p5 = scmp.ge.s32.totalorder %s2693_s17, 1 }
   0xb   : > { %p2774_p6 = por %p147_p3, %p61_p0  ;;  %p154_p7 = scmp.lt.s32.totalorder %s2693_s17, 5 }
   0xc   : > { %s2695_s25 = smov [#allocation6]   ;;  %s39_s28 = sadd.s32 1, %s2689_s16 }
   0xd   : > { %s3115_s23 = scalar_select %p2774_p6, 1, 0 }
   0xe   : > { %p2779_p8 = pnand %p1911_p5, %p154_p7  ;;  %s170_s26 = sshll.u32 %s2695_s25, 4  ;;  %s171_s26 = int_to_ptr.vmem [resolvable:$true] %s170_s26 }
   0xf   : > { %s2566_s29 = scalar_lea.vmem %s171_s26, 2048  ;;  %p2574_p3 = scmp.lt.s32.totalorder %s171_s26, %s171_s26 }
  0x10   : > { %p2371_p9 = pneg %p2779_p8  ;;  %p2567_p12 = scmp.ne.s32.totalorder %s171_s26, %s2566_s29 }
  0x11   : > { %p2575_p5 = scmp.lt.s32.totalorder %s2566_s29, %s2566_s29 }
  0x12   : > { %p2787_p10 = pnand %p2371_p9, %p2759_p1 }
  0x13   : > { %p2576_p7 = por %p2575_p5, %p2574_p3 }
  0x14   : > { %p2557_p11 = pneg %p2787_p10 }
  0x16   : > { %p2569_p13 = pnand %p2567_p12, %p2557_p11 }
  0x18   : > { %p2570_p0 = pneg %p2569_p13 }
  0x1a   : > { %p2577_p6 = pnand %p2576_p7, %p2570_p0 }
  0x1c   : > { %2580 = shalt.err (!%p2577_p6)
}
  0x1d   : > { %s2696_s30 = smov 64   ;;  %s2697_s4 = smov 4  }
  0x1e   : > { %2374 = dma.hbm_to_vmem [thread:$0]  (!%p2787_p10), %s3108_s1, 2048, %s171_s26, [#allocation7], %s2696_s30, %s2696_s30, %s2697_s4  }
  0x1f   : > { %p41_p9 = scmp.ge.s32.totalorder %s39_s28, 4  ;;  %s48_s7 = sadd.s32 1, %s2681_s14 }
  0x20   : > { %p55_p6 = scmp.ne.s32.totalorder %s2681_s14, %s2677_s13  ;;  %p56_p11 = scmp.eq.s32.totalorder %s2693_s17, 0 }
  0x21   : > { %s3129_s28 = smov (%p41_p9, %s39_s28), 0  ;;  %p2384_p0 = scmp.lt.s32.totalorder %s2693_s17, 4 }
  0x22   : > { %p2805_p12 = por %p56_p11, %p55_p6  ;;  %p2811_p13 = por %p2763_p2, %p55_p6 }
  0x23   : > { %s43_s10 = ssub.s32 %s2689_s16, %s3129_s28  ;;  %s190_s11 = sand.u32 1, %s2681_s14  }
  0x24   : > { %s3119_s9 = scalar_select %p2811_p13, 1, 0 }
  0x25   : > { %p46_p10 = scmp.eq.s32.totalorder %s43_s10, 0  ;;  %s1915_s18 = sshll.u32 %s190_s11, 9 }
  0x26   : > { %s2074_s25 = sshll.u32 %s2689_s16, 13  ;;  %s194_s30 = scalar_lea.vmem [#allocation3], %s1915_s18 }
  0x27   : > { %s2820_s19 = scalar_select %p46_p10, %s2681_s14, %s48_s7  }
  0x28   : > { %s203_s29 = scalar_lea.hbm %s3107_s0, %s2074_s25  ;;  %s204_s4 = sshll.u32 %s194_s30, 4  ;;  %s205_s4 = int_to_ptr.vmem [resolvable:$true] %s204_s4 }
  0x29   : > { %p2828_p2 = pnand %p2384_p0, %p2805_p12  ;;  %s191_s5 = scalar_lea.sflag [#allocation4], %s190_s11 }
  0x2a   : > { %s2594_s6 = scalar_lea.vmem %s205_s4, 8192  ;;  %s2698_s7 = smov [#allocation3]  }
  0x2b   : > { %p2583_p3 = pneg %p2828_p2  ;;  %p2595_p5 = scmp.ne.s32.totalorder %s205_s4, %s2594_s6 }
  0x2c   : > { %s2599_s10 = sshll.u32 %s2698_s7, 4  ;;  %s2600_s10 = int_to_ptr.vmem [resolvable:$false] %s2599_s10 }
  0x2d   : > { %p2597_p7 = pnand %p2595_p5, %p2583_p3  ;;  %s2601_s25 = scalar_lea.vmem %s2600_s10, 16384 }
  0x2e   : > { %p2602_p6 = scmp.lt.s32.totalorder %s205_s4, %s2600_s10  ;;  %p2603_p11 = scmp.lt.s32.totalorder %s2601_s25, %s2594_s6 }
  0x2f   : > { %p2598_p9 = pneg %p2597_p7 }
  0x30   : > { %p2604_p10 = por %p2603_p11, %p2602_p6 }
  0x32   : > { %p2605_p13 = pnand %p2604_p10, %p2598_p9 }
  0x34   : > { %2608 = shalt.err (!%p2605_p13)
}
  0x35   : > { %s2699_s8 = smov 128   ;;  %s2700_s18 = smov 8  }
  0x36   : > { %2378 = dma.hbm_to_vmem [thread:$0]  (!%p2828_p2), %s203_s29, 8192, %s205_s4, %s191_s5, %s2699_s8, %s2699_s8, %s2700_s18  }
  0x37   : > { %216 = sbr.rel (%p2779_p8) target bundleno = 463 (0x1cf), region = 32  ;;  %s2839_s11 = sand.u32 (!%p2779_p8), 1, %s2677_s13  }
  0x38   : > { %s1920_s26 = sshll.u32 (!%p2779_p8), %s2839_s11, 9  ;;  %s219_s27 = scalar_lea.sflag (!%p2779_p8), [#allocation4], %s2839_s11 }
  0x39   : > { %s2843_s30 = scalar_lea.vmem (!%p2779_p8), [#allocation3], %s1920_s26 }
  0x3c   : > { %2660 = dma.done.wait (%p2769_p4), %s219_s27, 8192  }
  0x3d   : > { %2662 = vsyncadd (%p2769_p4), %s219_s27, 4294959104 }
  0x3e   : > { %2664 = dma.done.wait (%p2759_p1), [#allocation7], 2048  }
  0x3f   : > { %2666 = vsyncadd (%p2759_p1), [#allocation7], 4294965248  ;;  %v2701_v0 = vmov 0   ;;  %v2443_v1 = vld [vmem:[#allocation6 + $0x38] sm:$0xff]   ;;  %v2444_v2 = vld [vmem:[#allocation6 + $0x30] sm:$0xff]   ;;  %s1922_s24 = sshll.u32 %s2839_s11, 8 }
  0x40   : > { %904 = vmatprep.subr.bf16.mxu0 %v2701_v0  ;;  %2331 = vmatprep.subr.bf16.mxu1 %v2701_v0  ;;  %v2445_v3 = vld [vmem:[#allocation6 + $0x28] sm:$0xff]   ;;  %v2446_v4 = vld [vmem:[#allocation6 + $0x20] sm:$0xff]   ;;  %v2447_v5 = vld [vmem:[#allocation6 + $0x18] sm:$0xff]   ;;  %s2959_s29 = scalar_lea.vmem [#allocation8], %s1922_s24  ;;  %s2139_s4 = sshll.u32 %s2685_s15, 12 }
  0x41   : > { %905 = vmatpush1.bf16.msra.mxu0 %v2443_v1  ;;  %2347 = vmatpush1.bf16.msra.mxu1 %v2443_v1  ;;  %v2461_v6 = vld [vmem:[%s2843_s30 + $0x4] ss:$8 sps:$4 sm:$0xff]   ;;  %v2448_v7 = vld [vmem:[#allocation6 + $0x10] sm:$0xff]   ;;  %v2451_v11 = vld [vmem:[#allocation6 + $0x78] sm:$0xff]   ;;  %s1794_s21 = sshll.u32 %s2959_s29, 4  ;;  %s3056_s7 = scalar_lea.hbm %s3110_s3, %s2139_s4  ;;  %s3058_s21 = int_to_ptr.vmem [resolvable:$true] %s1794_s21 }
  0x42   : > { %906 = vmatprep.subr.bf16.mxu0 %v2701_v0  ;;  %2332 = vmatprep.subr.bf16.mxu1 %v2701_v0  ;;  %v2464_v8 = vld [vmem:[%s2843_s30 + $0x104] ss:$8 sps:$4 sm:$0xff]   ;;  %v2452_v12 = vld [vmem:[#allocation6 + $0x70] sm:$0xff]   ;;  %v2455_v15 = vld [vmem:[#allocation6 + $0x58] sm:$0xff]   ;;  %s1780_s15 = scalar_lea.sflag [#allocation5], %s2839_s11  ;;  %s2609_s10 = scalar_lea.vmem %s3058_s21, 4096 }
  0x43   : > { %936 = vmatprep.mubr.bf16.mxu0 %v2461_v6  ;;  %1064 = vmatprep.mubr.bf16.mxu1 %v2464_v8  ;;  %v2449_v9 = vld [vmem:[#allocation6 + $0x8] sm:$0xff]   ;;  %v2450_v10 = vld [vmem:[#allocation6] sm:$0xff]   ;;  %v2456_v16 = vld [vmem:[#allocation6 + $0x50] sm:$0xff]   ;;  %p2610_p1 = scmp.ne.s32.totalorder %s3058_s21, %s2609_s10  ;;  %p3121_p4 = scmp.ne.s32.totalorder %s3119_s9, 0 }
  0x44   : > { %v2453_v13 = vld [vmem:[#allocation6 + $0x68] sm:$0xff]   ;;  %v2454_v14 = vld [vmem:[#allocation6 + $0x60] sm:$0xff]   ;;  %v2465_v21 = vld [vmem:[%s2843_s30 + $0x14] ss:$8 sps:$4 sm:$0xff]   ;;  %s2702_s25 = smov [#allocation8]  }
  0x45   : > { %907 = vmatpush1.bf16.msra.mxu0 %v2444_v2  ;;  %2348 = vmatpush1.bf16.msra.mxu1 %v2444_v2  ;;  %v2457_v17 = vld [vmem:[#allocation6 + $0x48] sm:$0xff]   ;;  %v2458_v18 = vld [vmem:[#allocation6 + $0x40] sm:$0xff]   ;;  %v2467_v22 = vld [vmem:[%s2843_s30 + $0x114] ss:$8 sps:$4 sm:$0xff]   ;;  %p2611_p8 = pnand %p2610_p1, %p3121_p4  ;;  %s2613_s8 = sshll.u32 %s2702_s25, 4  ;;  %s2614_s8 = int_to_ptr.vmem [resolvable:$false] %s2613_s8 }
  0x46   : > { %908 = vmatprep.subr.bf16.mxu0 %v2701_v0  ;;  %2333 = vmatprep.subr.bf16.mxu1 %v2701_v0  ;;  %v2459_v19 = vld [vmem:[%s2843_s30] ss:$8 sps:$4 sm:$0xff]   ;;  %v2469_v23 = vld [vmem:[%s2843_s30 + $0x10] ss:$8 sps:$4 sm:$0xff]   ;;  %v2471_v25 = vld [vmem:[%s2843_s30 + $0x24] ss:$8 sps:$4 sm:$0xff]   ;;  %p2616_p13 = scmp.lt.s32.totalorder %s3058_s21, %s2614_s8 }
  0x47   : > { %v2462_v20 = vld [vmem:[%s2843_s30 + $0x100] ss:$8 sps:$4 sm:$0xff]   ;;  %v2470_v24 = vld [vmem:[%s2843_s30 + $0x110] ss:$8 sps:$4 sm:$0xff]   ;;  %v2473_v26 = vld [vmem:[%s2843_s30 + $0x124] ss:$8 sps:$4 sm:$0xff]   ;;  %p2612_p12 = pneg %p2611_p8 }
  0x48   : > { %v2475_v27 = vld [vmem:[%s2843_s30 + $0x20] ss:$8 sps:$4 sm:$0xff]   ;;  %v2477_v29 = vld [vmem:[%s2843_s30 + $0x34] ss:$8 sps:$4 sm:$0xff]   ;;  %v2481_v31 = vld [vmem:[%s2843_s30 + $0x30] ss:$8 sps:$4 sm:$0xff]  }
  0x49   : > { %909 = vmatpush1.bf16.msra.mxu0 %v2445_v3  ;;  %2349 = vmatpush1.bf16.msra.mxu1 %v2445_v3  ;;  %v2476_v28 = vld [vmem:[%s2843_s30 + $0x120] ss:$8 sps:$4 sm:$0xff]   ;;  %v2479_v30 = vld [vmem:[%s2843_s30 + $0x134] ss:$8 sps:$4 sm:$0xff]   ;;  %v2482_v32 = vld [vmem:[%s2843_s30 + $0x130] ss:$8 sps:$4 sm:$0xff]  }
  0x4a   : > { %910 = vmatprep.subr.bf16.mxu0 %v2701_v0  ;;  %2334 = vmatprep.subr.bf16.mxu1 %v2701_v0  ;;  %v2483_v33 = vld [vmem:[%s2843_s30 + $0x44] ss:$8 sps:$4 sm:$0xff]   ;;  %v2487_v35 = vld [vmem:[%s2843_s30 + $0x40] ss:$8 sps:$4 sm:$0xff]   ;;  %v2489_v37 = vld [vmem:[%s2843_s30 + $0x54] ss:$8 sps:$4 sm:$0xff]  }
  0x4b   : > { %v2485_v34 = vld [vmem:[%s2843_s30 + $0x144] ss:$8 sps:$4 sm:$0xff]   ;;  %v2488_v36 = vld [vmem:[%s2843_s30 + $0x140] ss:$8 sps:$4 sm:$0xff]   ;;  %v2491_v38 = vld [vmem:[%s2843_s30 + $0x154] ss:$8 sps:$4 sm:$0xff]  }
  0x4c   : > { %v2493_v39 = vld [vmem:[%s2843_s30 + $0x50] ss:$8 sps:$4 sm:$0xff]   ;;  %v2495_v41 = vld [vmem:[%s2843_s30 + $0x64] ss:$8 sps:$4 sm:$0xff]   ;;  %v2499_v43 = vld [vmem:[%s2843_s30 + $0x60] ss:$8 sps:$4 sm:$0xff]  }
  0x4d   : > { %911 = vmatpush1.bf16.msra.mxu0 %v2446_v4  ;;  %2350 = vmatpush1.bf16.msra.mxu1 %v2446_v4  ;;  %v2494_v40 = vld [vmem:[%s2843_s30 + $0x150] ss:$8 sps:$4 sm:$0xff]   ;;  %v2497_v42 = vld [vmem:[%s2843_s30 + $0x164] ss:$8 sps:$4 sm:$0xff]   ;;  %v2500_v44 = vld [vmem:[%s2843_s30 + $0x160] ss:$8 sps:$4 sm:$0xff]  }
  0x4e   : > { %912 = vmatprep.subr.bf16.mxu0 %v2701_v0  ;;  %2335 = vmatprep.subr.bf16.mxu1 %v2701_v0  ;;  %v2501_v45 = vld [vmem:[%s2843_s30 + $0x74] ss:$8 sps:$4 sm:$0xff]   ;;  %v2505_v47 = vld [vmem:[%s2843_s30 + $0x70] ss:$8 sps:$4 sm:$0xff]   ;;  %v2507_v49 = vld [vmem:[%s2843_s30 + $0x84] ss:$8 sps:$4 sm:$0xff]  }
  0x4f   : > { %v2503_v46 = vld [vmem:[%s2843_s30 + $0x174] ss:$8 sps:$4 sm:$0xff]   ;;  %v2506_v48 = vld [vmem:[%s2843_s30 + $0x170] ss:$8 sps:$4 sm:$0xff]   ;;  %v2509_v50 = vld [vmem:[%s2843_s30 + $0x184] ss:$8 sps:$4 sm:$0xff]  }
  0x50   : > { %v2511_v51 = vld [vmem:[%s2843_s30 + $0x80] ss:$8 sps:$4 sm:$0xff]   ;;  %v2513_v53 = vld [vmem:[%s2843_s30 + $0x94] ss:$8 sps:$4 sm:$0xff]   ;;  %v2517_v55 = vld [vmem:[%s2843_s30 + $0x90] ss:$8 sps:$4 sm:$0xff]  }
  0x51   : > { %913 = vmatpush1.bf16.msra.mxu0 %v2447_v5  ;;  %2351 = vmatpush1.bf16.msra.mxu1 %v2447_v5  ;;  %v2512_v52 = vld [vmem:[%s2843_s30 + $0x180] ss:$8 sps:$4 sm:$0xff]   ;;  %v2515_v54 = vld [vmem:[%s2843_s30 + $0x194] ss:$8 sps:$4 sm:$0xff]   ;;  %v2518_v56 = vld [vmem:[%s2843_s30 + $0x190] ss:$8 sps:$4 sm:$0xff]  }
  0x52   : > { %914 = vmatprep.subr.bf16.mxu0 %v2701_v0  ;;  %2336 = vmatprep.subr.bf16.mxu1 %v2701_v0  ;;  %v2519_v57 = vld [vmem:[%s2843_s30 + $0xa4] ss:$8 sps:$4 sm:$0xff]   ;;  %v2523_v59 = vld [vmem:[%s2843_s30 + $0xa0] ss:$8 sps:$4 sm:$0xff]   ;;  %v2525_v61 = vld [vmem:[%s2843_s30 + $0xb4] ss:$8 sps:$4 sm:$0xff]  }
  0x53   : > { %v2521_v58 = vld [vmem:[%s2843_s30 + $0x1a4] ss:$8 sps:$4 sm:$0xff]   ;;  %v2524_v60 = vld [vmem:[%s2843_s30 + $0x1a0] ss:$8 sps:$4 sm:$0xff]   ;;  %v2527_v62 = vld [vmem:[%s2843_s30 + $0x1b4] ss:$8 sps:$4 sm:$0xff]  }
  0x54   : > { %v2529_v63 = vld [vmem:[%s2843_s30 + $0xb0] ss:$8 sps:$4 sm:$0xff]   ;;  %v2531_v1 = vld [vmem:[%s2843_s30 + $0xc4] ss:$8 sps:$4 sm:$0xff]   ;;  %v2535_v3 = vld [vmem:[%s2843_s30 + $0xc0] ss:$8 sps:$4 sm:$0xff]  }
  0x55   : > { %915 = vmatpush1.bf16.msra.mxu0 %v2448_v7  ;;  %2352 = vmatpush1.bf16.msra.mxu1 %v2448_v7  ;;  %v2533_v2 = vld [vmem:[%s2843_s30 + $0x1c4] ss:$8 sps:$4 sm:$0xff]   ;;  %v2536_v4 = vld [vmem:[%s2843_s30 + $0x1c0] ss:$8 sps:$4 sm:$0xff]   ;;  %v2537_v5 = vld [vmem:[%s2843_s30 + $0xd4] ss:$8 sps:$4 sm:$0xff]  }
  0x56   : > { %916 = vmatprep.subr.bf16.mxu0 %v2701_v0  ;;  %2337 = vmatprep.subr.bf16.mxu1 %v2701_v0  ;;  %v2539_v6 = vld [vmem:[%s2843_s30 + $0x1d4] ss:$8 sps:$4 sm:$0xff]   ;;  %v2541_v7 = vld [vmem:[%s2843_s30 + $0xd0] ss:$8 sps:$4 sm:$0xff]   ;;  %s2615_s18 = scalar_lea.vmem %s2614_s8, 8192 }
  0x57   : > { %v2542_v8 = vld [vmem:[%s2843_s30 + $0x1d0] ss:$8 sps:$4 sm:$0xff]   ;;  %p2617_p0 = scmp.lt.s32.totalorder %s2615_s18, %s2609_s10 }
  0x59   : > { %917 = vmatpush1.bf16.msra.mxu0 %v2449_v9  ;;  %2353 = vmatpush1.bf16.msra.mxu1 %v2449_v9  ;;  %v2543_v9 = vld [vmem:[%s2843_s30 + $0xe4] ss:$8 sps:$4 sm:$0xff]   ;;  %p2618_p2 = por %p2617_p0, %p2616_p13 }
  0x5a   : > { %918 = vmatprep.subr.bf16.mxu0 %v2701_v0  ;;  %2338 = vmatprep.subr.bf16.mxu1 %v2701_v0 }
  0x5b   : > { %p2619_p3 = pnand %p2618_p2, %p2612_p12 }
  0x5d   : > { %919 = vmatpush1.bf16.msra.mxu0 %v2450_v10  ;;  %2354 = vmatpush1.bf16.msra.mxu1 %v2450_v10  ;;  %v2545_v10 = vld [vmem:[%s2843_s30 + $0x1e4] ss:$8 sps:$4 sm:$0xff]  }
  0x5e   : > { %920 = vmatprep.subr.bf16.mxu0 %v2701_v0  ;;  %2339 = vmatprep.subr.bf16.mxu1 %v2701_v0 }
  0x61   : > { %921 = vmatpush2.bf16.msra.mxu0 %v2451_v11  ;;  %2355 = vmatpush2.bf16.msra.mxu1 %v2451_v11  ;;  %v2547_v11 = vld [vmem:[%s2843_s30 + $0xe0] ss:$8 sps:$4 sm:$0xff]  }
  0x62   : > { %922 = vmatprep.subr.bf16.mxu0 %v2701_v0  ;;  %2340 = vmatprep.subr.bf16.mxu1 %v2701_v0 }
  0x65   : > { %923 = vmatpush2.bf16.msra.mxu0 %v2452_v12  ;;  %2356 = vmatpush2.bf16.msra.mxu1 %v2452_v12  ;;  %v2548_v12 = vld [vmem:[%s2843_s30 + $0x1e0] ss:$8 sps:$4 sm:$0xff]  }
  0x66   : > { %924 = vmatprep.subr.bf16.mxu0 %v2701_v0  ;;  %2341 = vmatprep.subr.bf16.mxu1 %v2701_v0 }
  0x69   : > { %925 = vmatpush2.bf16.msra.mxu0 %v2453_v13  ;;  %2357 = vmatpush2.bf16.msra.mxu1 %v2453_v13  ;;  %v2549_v13 = vld [vmem:[%s2843_s30 + $0xf4] ss:$8 sps:$4 sm:$0xff]  }
  0x6a   : > { %926 = vmatprep.subr.bf16.mxu0 %v2701_v0  ;;  %2342 = vmatprep.subr.bf16.mxu1 %v2701_v0 }
  0x6d   : > { %927 = vmatpush2.bf16.msra.mxu0 %v2454_v14  ;;  %2358 = vmatpush2.bf16.msra.mxu1 %v2454_v14  ;;  %v2551_v14 = vld [vmem:[%s2843_s30 + $0x1f4] ss:$8 sps:$4 sm:$0xff]  }
  0x6e   : > { %928 = vmatprep.subr.bf16.mxu0 %v2701_v0  ;;  %2343 = vmatprep.subr.bf16.mxu1 %v2701_v0 }
  0x71   : > { %929 = vmatpush2.bf16.msra.mxu0 %v2455_v15  ;;  %2359 = vmatpush2.bf16.msra.mxu1 %v2455_v15  ;;  %v2553_v15 = vld [vmem:[%s2843_s30 + $0xf0] ss:$8 sps:$4 sm:$0xff]  }
  0x72   : > { %930 = vmatprep.subr.bf16.mxu0 %v2701_v0  ;;  %2344 = vmatprep.subr.bf16.mxu1 %v2701_v0 }
  0x75   : > { %931 = vmatpush2.bf16.msra.mxu0 %v2456_v16  ;;  %2360 = vmatpush2.bf16.msra.mxu1 %v2456_v16  ;;  %v2554_v16 = vld [vmem:[%s2843_s30 + $0x1f0] ss:$8 sps:$4 sm:$0xff]  }
  0x76   : > { %932 = vmatprep.subr.bf16.mxu0 %v2701_v0  ;;  %2345 = vmatprep.subr.bf16.mxu1 %v2701_v0 }
  0x79   : > { %933 = vmatpush2.bf16.msra.mxu0 %v2457_v17  ;;  %2361 = vmatpush2.bf16.msra.mxu1 %v2457_v17 }
  0x7a   : > { %934 = vmatprep.subr.bf16.mxu0 %v2701_v0  ;;  %2346 = vmatprep.subr.bf16.mxu1 %v2701_v0  ;;  %v2530_v0 = vld [vmem:[%s2843_s30 + $0x1b0] ss:$8 sps:$4 sm:$0xff]  }
  0x7d   : > { %935 = vmatpush2.bf16.msra.mxu0 %v2458_v18  ;;  %2362 = vmatpush2.bf16.msra.mxu1 %v2458_v18 }
  0x80   : > { %937 = vmatmul.mubr.bf16.vlgmr.msra.gmra.mxu0 %v2459_v19  ;;  %1065 = vmatmul.mubr.bf16.vlgmr.msra.gmra.mxu1 %v2462_v20  ;;  %v2952_v19 = vld [vmem:[%s3109_s2] ss:$0 sm:$0xff] }
  0x81   : > { %944 = vmatprep.mubr.bf16.mxu0 %v2465_v21  ;;  %1072 = vmatprep.mubr.bf16.mxu1 %v2467_v22 }
  0x88   : > { %945 = vmatmul.mubr.bf16.gmra.mxu0 %v2469_v23  ;;  %1073 = vmatmul.mubr.bf16.gmra.mxu1 %v2470_v24 }
  0x89   : > { %952 = vmatprep.mubr.bf16.mxu0 %v2471_v25  ;;  %1080 = vmatprep.mubr.bf16.mxu1 %v2473_v26 }
  0x90   : > { %953 = vmatmul.mubr.bf16.gmra.mxu0 %v2475_v27  ;;  %1081 = vmatmul.mubr.bf16.gmra.mxu1 %v2476_v28 }
  0x91   : > { %960 = vmatprep.mubr.bf16.mxu0 %v2477_v29  ;;  %1088 = vmatprep.mubr.bf16.mxu1 %v2479_v30 }
  0x98   : > { %961 = vmatmul.mubr.bf16.gmra.mxu0 %v2481_v31  ;;  %1089 = vmatmul.mubr.bf16.gmra.mxu1 %v2482_v32 }
  0x99   : > { %968 = vmatprep.mubr.bf16.mxu0 %v2483_v33  ;;  %1096 = vmatprep.mubr.bf16.mxu1 %v2485_v34 }
  0xa0   : > { %969 = vmatmul.mubr.bf16.gmra.mxu0 %v2487_v35  ;;  %1097 = vmatmul.mubr.bf16.gmra.mxu1 %v2488_v36 }
  0xa1   : > { %976 = vmatprep.mubr.bf16.mxu0 %v2489_v37  ;;  %1104 = vmatprep.mubr.bf16.mxu1 %v2491_v38 }
  0xa8   : > { %977 = vmatmul.mubr.bf16.gmra.mxu0 %v2493_v39  ;;  %1105 = vmatmul.mubr.bf16.gmra.mxu1 %v2494_v40 }
  0xa9   : > { %984 = vmatprep.mubr.bf16.mxu0 %v2495_v41  ;;  %1112 = vmatprep.mubr.bf16.mxu1 %v2497_v42 }
  0xb0   : > { %985 = vmatmul.mubr.bf16.gmra.mxu0 %v2499_v43  ;;  %1113 = vmatmul.mubr.bf16.gmra.mxu1 %v2500_v44 }
  0xb1   : > { %992 = vmatprep.mubr.bf16.mxu0 %v2501_v45  ;;  %1120 = vmatprep.mubr.bf16.mxu1 %v2503_v46 }
  0xb8   : > { %993 = vmatmul.mubr.bf16.gmra.mxu0 %v2505_v47  ;;  %1121 = vmatmul.mubr.bf16.gmra.mxu1 %v2506_v48 }
  0xb9   : > { %1000 = vmatprep.mubr.bf16.mxu0 %v2507_v49  ;;  %1128 = vmatprep.mubr.bf16.mxu1 %v2509_v50 }
  0xc0   : > { %1001 = vmatmul.mubr.bf16.gmra.mxu0 %v2511_v51  ;;  %1129 = vmatmul.mubr.bf16.gmra.mxu1 %v2512_v52 }
  0xc1   : > { %1008 = vmatprep.mubr.bf16.mxu0 %v2513_v53  ;;  %1136 = vmatprep.mubr.bf16.mxu1 %v2515_v54 }
  0xc8   : > { %1009 = vmatmul.mubr.bf16.gmra.mxu0 %v2517_v55  ;;  %1137 = vmatmul.mubr.bf16.gmra.mxu1 %v2518_v56 }
  0xc9   : > { %1016 = vmatprep.mubr.bf16.mxu0 %v2519_v57  ;;  %1144 = vmatprep.mubr.bf16.mxu1 %v2521_v58 }
  0xd0   : > { %1017 = vmatmul.mubr.bf16.gmra.mxu0 %v2523_v59  ;;  %1145 = vmatmul.mubr.bf16.gmra.mxu1 %v2524_v60 }
  0xd1   : > { %1024 = vmatprep.mubr.bf16.mxu0 %v2525_v61  ;;  %1152 = vmatprep.mubr.bf16.mxu1 %v2527_v62 }
  0xd8   : > { %1025 = vmatmul.mubr.bf16.gmra.mxu0 %v2529_v63  ;;  %1153 = vmatmul.mubr.bf16.gmra.mxu1 %v2530_v0 }
  0xd9   : > { %1032 = vmatprep.mubr.bf16.mxu0 %v2531_v1  ;;  %1160 = vmatprep.mubr.bf16.mxu1 %v2533_v2 }
  0xe0   : > { %1033 = vmatmul.mubr.bf16.gmra.mxu0 %v2535_v3  ;;  %1161 = vmatmul.mubr.bf16.gmra.mxu1 %v2536_v4 }
  0xe1   : > { %1040 = vmatprep.mubr.bf16.mxu0 %v2537_v5  ;;  %1168 = vmatprep.mubr.bf16.mxu1 %v2539_v6 }
  0xe8   : > { %1041 = vmatmul.mubr.bf16.gmra.mxu0 %v2541_v7  ;;  %1169 = vmatmul.mubr.bf16.gmra.mxu1 %v2542_v8 }
  0xe9   : > { %1048 = vmatprep.mubr.bf16.mxu0 %v2543_v9  ;;  %1176 = vmatprep.mubr.bf16.mxu1 %v2545_v10 }
  0xf0   : > { %1049 = vmatmul.mubr.bf16.gmra.mxu0 %v2547_v11  ;;  %1177 = vmatmul.mubr.bf16.gmra.mxu1 %v2548_v12 }
  0xf1   : > { %1056 = vmatprep.mubr.bf16.mxu0 %v2549_v13  ;;  %1184 = vmatprep.mubr.bf16.mxu1 %v2551_v14 }
  0xf8   : > { %1057 = vmatmul.mubr.bf16.gmra.mxu0 %v2553_v15  ;;  %1185 = vmatmul.mubr.bf16.gmra.mxu1 %v2554_v16 }
 0x140   : > { %v938_v17 = vpop.f32.mrf.mxu0  ;;  %v1066_v18 = vpop.f32.mrf.mxu1 }
 0x141   : > { %v1395_v24 = vadd.f32 %v2952_v19, %v938_v17  ;;  %v1427_v25 = vadd.f32 %v2952_v19, %v1066_v18 }
 0x142   : > { %v940_v20 = vpop.f32.mrf.mxu0  ;;  %v1068_v21 = vpop.f32.mrf.mxu1 }
 0x144   : > { %v941_v22 = vpop.f32.mrf.mxu0  ;;  %v1069_v23 = vpop.f32.mrf.mxu1 }
 0x145   : > { %v1396_v26 = vadd.f32 %v2952_v19, %v941_v22  ;;  %v1428_v27 = vadd.f32 %v2952_v19, %v1069_v23 }
 0x146   : > { %v943_v28 = vpop.f32.mrf.mxu0  ;;  %v1071_v29 = vpop.f32.mrf.mxu1 }
 0x147   : > { %v2143_v30 = vpack.c.bf16 %v1396_v26, %v1395_v24  ;;  %v2223_v31 = vpack.c.bf16 %v1428_v27, %v1427_v25 }
 0x148   : > { %v946_v32 = vpop.f32.mrf.mxu0  ;;  %v1074_v33 = vpop.f32.mrf.mxu1 }
 0x149   : > { %2144 = vst [vmem:[%s2959_s29] sm:$0xff] %v2143_v30   ;;  %2315 = vst [vmem:[%s2959_s29 + $0x80] sm:$0xff] %v2223_v31   ;;  %v1397_v38 = vadd.f32 %v2952_v19, %v946_v32  ;;  %v1429_v39 = vadd.f32 %v2952_v19, %v1074_v33 }
 0x14a   : > { %v948_v34 = vpop.f32.mrf.mxu0  ;;  %v1076_v35 = vpop.f32.mrf.mxu1 }
 0x14c   : > { %v949_v36 = vpop.f32.mrf.mxu0  ;;  %v1077_v37 = vpop.f32.mrf.mxu1 }
 0x14d   : > { %v1398_v40 = vadd.f32 %v2952_v19, %v949_v36  ;;  %v1430_v41 = vadd.f32 %v2952_v19, %v1077_v37 }
 0x14e   : > { %v951_v42 = vpop.f32.mrf.mxu0  ;;  %v1079_v43 = vpop.f32.mrf.mxu1 }
 0x14f   : > { %v2148_v44 = vpack.c.bf16 %v1398_v40, %v1397_v38  ;;  %v2228_v45 = vpack.c.bf16 %v1430_v41, %v1429_v39 }
 0x150   : > { %v954_v46 = vpop.f32.mrf.mxu0  ;;  %v1082_v47 = vpop.f32.mrf.mxu1 }
 0x151   : > { %2300 = vst [vmem:[%s2959_s29 + $0x8] sm:$0xff] %v2148_v44   ;;  %2316 = vst [vmem:[%s2959_s29 + $0x88] sm:$0xff] %v2228_v45   ;;  %v1399_v52 = vadd.f32 %v2952_v19, %v954_v46  ;;  %v1431_v53 = vadd.f32 %v2952_v19, %v1082_v47 }
 0x152   : > { %v956_v48 = vpop.f32.mrf.mxu0  ;;  %v1084_v49 = vpop.f32.mrf.mxu1 }
 0x154   : > { %v957_v50 = vpop.f32.mrf.mxu0  ;;  %v1085_v51 = vpop.f32.mrf.mxu1 }
 0x155   : > { %v1400_v54 = vadd.f32 %v2952_v19, %v957_v50  ;;  %v1432_v55 = vadd.f32 %v2952_v19, %v1085_v51 }
 0x156   : > { %v959_v56 = vpop.f32.mrf.mxu0  ;;  %v1087_v57 = vpop.f32.mrf.mxu1 }
 0x157   : > { %v2153_v58 = vpack.c.bf16 %v1400_v54, %v1399_v52  ;;  %v2233_v59 = vpack.c.bf16 %v1432_v55, %v1431_v53 }
 0x158   : > { %v962_v60 = vpop.f32.mrf.mxu0  ;;  %v1090_v61 = vpop.f32.mrf.mxu1 }
 0x159   : > { %2301 = vst [vmem:[%s2959_s29 + $0x10] sm:$0xff] %v2153_v58   ;;  %2317 = vst [vmem:[%s2959_s29 + $0x90] sm:$0xff] %v2233_v59   ;;  %v1401_v2 = vadd.f32 %v2952_v19, %v962_v60  ;;  %v1433_v3 = vadd.f32 %v2952_v19, %v1090_v61 }
 0x15a   : > { %v964_v62 = vpop.f32.mrf.mxu0  ;;  %v1092_v63 = vpop.f32.mrf.mxu1 }
 0x15c   : > { %v965_v0 = vpop.f32.mrf.mxu0  ;;  %v1093_v1 = vpop.f32.mrf.mxu1 }
 0x15d   : > { %v1402_v4 = vadd.f32 %v2952_v19, %v965_v0  ;;  %v1434_v5 = vadd.f32 %v2952_v19, %v1093_v1 }
 0x15e   : > { %v967_v6 = vpop.f32.mrf.mxu0  ;;  %v1095_v7 = vpop.f32.mrf.mxu1 }
 0x15f   : > { %v2158_v8 = vpack.c.bf16 %v1402_v4, %v1401_v2  ;;  %v2238_v9 = vpack.c.bf16 %v1434_v5, %v1433_v3 }
 0x160   : > { %v970_v10 = vpop.f32.mrf.mxu0  ;;  %v1098_v11 = vpop.f32.mrf.mxu1 }
 0x161   : > { %2302 = vst [vmem:[%s2959_s29 + $0x18] sm:$0xff] %v2158_v8   ;;  %2318 = vst [vmem:[%s2959_s29 + $0x98] sm:$0xff] %v2238_v9   ;;  %v1403_v16 = vadd.f32 %v2952_v19, %v970_v10  ;;  %v1435_v17 = vadd.f32 %v2952_v19, %v1098_v11 }
 0x162   : > { %v972_v12 = vpop.f32.mrf.mxu0  ;;  %v1100_v13 = vpop.f32.mrf.mxu1 }
 0x164   : > { %v973_v14 = vpop.f32.mrf.mxu0  ;;  %v1101_v15 = vpop.f32.mrf.mxu1 }
 0x165   : > { %v1404_v18 = vadd.f32 %v2952_v19, %v973_v14  ;;  %v1436_v20 = vadd.f32 %v2952_v19, %v1101_v15 }
 0x166   : > { %v975_v21 = vpop.f32.mrf.mxu0  ;;  %v1103_v22 = vpop.f32.mrf.mxu1 }
 0x167   : > { %v2163_v23 = vpack.c.bf16 %v1404_v18, %v1403_v16  ;;  %v2243_v24 = vpack.c.bf16 %v1436_v20, %v1435_v17 }
 0x168   : > { %v978_v25 = vpop.f32.mrf.mxu0  ;;  %v1106_v26 = vpop.f32.mrf.mxu1 }
 0x169   : > { %2303 = vst [vmem:[%s2959_s29 + $0x20] sm:$0xff] %v2163_v23   ;;  %2319 = vst [vmem:[%s2959_s29 + $0xa0] sm:$0xff] %v2243_v24   ;;  %v1405_v31 = vadd.f32 %v2952_v19, %v978_v25  ;;  %v1437_v32 = vadd.f32 %v2952_v19, %v1106_v26 }
 0x16a   : > { %v980_v27 = vpop.f32.mrf.mxu0  ;;  %v1108_v28 = vpop.f32.mrf.mxu1 }
 0x16c   : > { %v981_v29 = vpop.f32.mrf.mxu0  ;;  %v1109_v30 = vpop.f32.mrf.mxu1 }
 0x16d   : > { %v1406_v33 = vadd.f32 %v2952_v19, %v981_v29  ;;  %v1438_v34 = vadd.f32 %v2952_v19, %v1109_v30 }
 0x16e   : > { %v983_v35 = vpop.f32.mrf.mxu0  ;;  %v1111_v36 = vpop.f32.mrf.mxu1 }
 0x16f   : > { %v2168_v37 = vpack.c.bf16 %v1406_v33, %v1405_v31  ;;  %v2248_v38 = vpack.c.bf16 %v1438_v34, %v1437_v32 }
 0x170   : > { %v986_v39 = vpop.f32.mrf.mxu0  ;;  %v1114_v40 = vpop.f32.mrf.mxu1 }
 0x171   : > { %2304 = vst [vmem:[%s2959_s29 + $0x28] sm:$0xff] %v2168_v37   ;;  %2320 = vst [vmem:[%s2959_s29 + $0xa8] sm:$0xff] %v2248_v38   ;;  %v1407_v45 = vadd.f32 %v2952_v19, %v986_v39  ;;  %v1439_v46 = vadd.f32 %v2952_v19, %v1114_v40 }
 0x172   : > { %v988_v41 = vpop.f32.mrf.mxu0  ;;  %v1116_v42 = vpop.f32.mrf.mxu1 }
 0x174   : > { %v989_v43 = vpop.f32.mrf.mxu0  ;;  %v1117_v44 = vpop.f32.mrf.mxu1 }
 0x175   : > { %v1408_v47 = vadd.f32 %v2952_v19, %v989_v43  ;;  %v1440_v48 = vadd.f32 %v2952_v19, %v1117_v44 }
 0x176   : > { %v991_v49 = vpop.f32.mrf.mxu0  ;;  %v1119_v50 = vpop.f32.mrf.mxu1 }
 0x177   : > { %v2173_v51 = vpack.c.bf16 %v1408_v47, %v1407_v45  ;;  %v2253_v52 = vpack.c.bf16 %v1440_v48, %v1439_v46 }
 0x178   : > { %v994_v53 = vpop.f32.mrf.mxu0  ;;  %v1122_v54 = vpop.f32.mrf.mxu1 }
 0x179   : > { %2305 = vst [vmem:[%s2959_s29 + $0x30] sm:$0xff] %v2173_v51   ;;  %2321 = vst [vmem:[%s2959_s29 + $0xb0] sm:$0xff] %v2253_v52   ;;  %v1409_v59 = vadd.f32 %v2952_v19, %v994_v53  ;;  %v1441_v60 = vadd.f32 %v2952_v19, %v1122_v54 }
 0x17a   : > { %v996_v55 = vpop.f32.mrf.mxu0  ;;  %v1124_v56 = vpop.f32.mrf.mxu1 }
 0x17c   : > { %v997_v57 = vpop.f32.mrf.mxu0  ;;  %v1125_v58 = vpop.f32.mrf.mxu1 }
 0x17d   : > { %v1410_v61 = vadd.f32 %v2952_v19, %v997_v57  ;;  %v1442_v62 = vadd.f32 %v2952_v19, %v1125_v58 }
 0x17e   : > { %v999_v63 = vpop.f32.mrf.mxu0  ;;  %v1127_v0 = vpop.f32.mrf.mxu1 }
 0x17f   : > { %v2178_v1 = vpack.c.bf16 %v1410_v61, %v1409_v59  ;;  %v2258_v2 = vpack.c.bf16 %v1442_v62, %v1441_v60 }
 0x180   : > { %v1002_v3 = vpop.f32.mrf.mxu0  ;;  %v1130_v4 = vpop.f32.mrf.mxu1 }
 0x181   : > { %2306 = vst [vmem:[%s2959_s29 + $0x38] sm:$0xff] %v2178_v1   ;;  %2322 = vst [vmem:[%s2959_s29 + $0xb8] sm:$0xff] %v2258_v2   ;;  %v1411_v9 = vadd.f32 %v2952_v19, %v1002_v3  ;;  %v1443_v10 = vadd.f32 %v2952_v19, %v1130_v4 }
 0x182   : > { %v1004_v5 = vpop.f32.mrf.mxu0  ;;  %v1132_v6 = vpop.f32.mrf.mxu1 }
 0x184   : > { %v1005_v7 = vpop.f32.mrf.mxu0  ;;  %v1133_v8 = vpop.f32.mrf.mxu1 }
 0x185   : > { %v1412_v11 = vadd.f32 %v2952_v19, %v1005_v7  ;;  %v1444_v12 = vadd.f32 %v2952_v19, %v1133_v8 }
 0x186   : > { %v1007_v13 = vpop.f32.mrf.mxu0  ;;  %v1135_v14 = vpop.f32.mrf.mxu1 }
 0x187   : > { %v2183_v15 = vpack.c.bf16 %v1412_v11, %v1411_v9  ;;  %v2263_v16 = vpack.c.bf16 %v1444_v12, %v1443_v10 }
 0x188   : > { %v1010_v17 = vpop.f32.mrf.mxu0  ;;  %v1138_v18 = vpop.f32.mrf.mxu1 }
 0x189   : > { %2307 = vst [vmem:[%s2959_s29 + $0x40] sm:$0xff] %v2183_v15   ;;  %2323 = vst [vmem:[%s2959_s29 + $0xc0] sm:$0xff] %v2263_v16   ;;  %v1413_v24 = vadd.f32 %v2952_v19, %v1010_v17  ;;  %v1445_v25 = vadd.f32 %v2952_v19, %v1138_v18 }
 0x18a   : > { %v1012_v20 = vpop.f32.mrf.mxu0  ;;  %v1140_v21 = vpop.f32.mrf.mxu1 }
 0x18c   : > { %v1013_v22 = vpop.f32.mrf.mxu0  ;;  %v1141_v23 = vpop.f32.mrf.mxu1 }
 0x18d   : > { %v1414_v26 = vadd.f32 %v2952_v19, %v1013_v22  ;;  %v1446_v27 = vadd.f32 %v2952_v19, %v1141_v23 }
 0x18e   : > { %v1015_v28 = vpop.f32.mrf.mxu0  ;;  %v1143_v29 = vpop.f32.mrf.mxu1 }
 0x18f   : > { %v2188_v30 = vpack.c.bf16 %v1414_v26, %v1413_v24  ;;  %v2268_v31 = vpack.c.bf16 %v1446_v27, %v1445_v25 }
 0x190   : > { %v1018_v32 = vpop.f32.mrf.mxu0  ;;  %v1146_v33 = vpop.f32.mrf.mxu1 }
 0x191   : > { %2308 = vst [vmem:[%s2959_s29 + $0x48] sm:$0xff] %v2188_v30   ;;  %2324 = vst [vmem:[%s2959_s29 + $0xc8] sm:$0xff] %v2268_v31   ;;  %v1415_v38 = vadd.f32 %v2952_v19, %v1018_v32  ;;  %v1447_v39 = vadd.f32 %v2952_v19, %v1146_v33 }
 0x192   : > { %v1020_v34 = vpop.f32.mrf.mxu0  ;;  %v1148_v35 = vpop.f32.mrf.mxu1 }
 0x194   : > { %v1021_v36 = vpop.f32.mrf.mxu0  ;;  %v1149_v37 = vpop.f32.mrf.mxu1 }
 0x195   : > { %v1416_v40 = vadd.f32 %v2952_v19, %v1021_v36  ;;  %v1448_v41 = vadd.f32 %v2952_v19, %v1149_v37 }
 0x196   : > { %v1023_v42 = vpop.f32.mrf.mxu0  ;;  %v1151_v43 = vpop.f32.mrf.mxu1 }
 0x197   : > { %v2193_v44 = vpack.c.bf16 %v1416_v40, %v1415_v38  ;;  %v2273_v45 = vpack.c.bf16 %v1448_v41, %v1447_v39 }
 0x198   : > { %v1026_v46 = vpop.f32.mrf.mxu0  ;;  %v1154_v47 = vpop.f32.mrf.mxu1 }
 0x199   : > { %2309 = vst [vmem:[%s2959_s29 + $0x50] sm:$0xff] %v2193_v44   ;;  %2325 = vst [vmem:[%s2959_s29 + $0xd0] sm:$0xff] %v2273_v45   ;;  %v1417_v52 = vadd.f32 %v2952_v19, %v1026_v46  ;;  %v1449_v53 = vadd.f32 %v2952_v19, %v1154_v47 }
 0x19a   : > { %v1028_v48 = vpop.f32.mrf.mxu0  ;;  %v1156_v49 = vpop.f32.mrf.mxu1 }
 0x19c   : > { %v1029_v50 = vpop.f32.mrf.mxu0  ;;  %v1157_v51 = vpop.f32.mrf.mxu1 }
 0x19d   : > { %v1418_v54 = vadd.f32 %v2952_v19, %v1029_v50  ;;  %v1450_v55 = vadd.f32 %v2952_v19, %v1157_v51 }
 0x19e   : > { %v1031_v56 = vpop.f32.mrf.mxu0  ;;  %v1159_v57 = vpop.f32.mrf.mxu1 }
 0x19f   : > { %v2198_v58 = vpack.c.bf16 %v1418_v54, %v1417_v52  ;;  %v2278_v59 = vpack.c.bf16 %v1450_v55, %v1449_v53 }
 0x1a0   : > { %v1034_v60 = vpop.f32.mrf.mxu0  ;;  %v1162_v61 = vpop.f32.mrf.mxu1 }
 0x1a1   : > { %2310 = vst [vmem:[%s2959_s29 + $0x58] sm:$0xff] %v2198_v58   ;;  %2326 = vst [vmem:[%s2959_s29 + $0xd8] sm:$0xff] %v2278_v59   ;;  %v1419_v2 = vadd.f32 %v2952_v19, %v1034_v60  ;;  %v1451_v3 = vadd.f32 %v2952_v19, %v1162_v61 }
 0x1a2   : > { %v1036_v62 = vpop.f32.mrf.mxu0  ;;  %v1164_v63 = vpop.f32.mrf.mxu1 }
 0x1a4   : > { %v1037_v0 = vpop.f32.mrf.mxu0  ;;  %v1165_v1 = vpop.f32.mrf.mxu1 }
 0x1a5   : > { %v1420_v4 = vadd.f32 %v2952_v19, %v1037_v0  ;;  %v1452_v5 = vadd.f32 %v2952_v19, %v1165_v1 }
 0x1a6   : > { %v1039_v6 = vpop.f32.mrf.mxu0  ;;  %v1167_v7 = vpop.f32.mrf.mxu1 }
 0x1a7   : > { %v2203_v8 = vpack.c.bf16 %v1420_v4, %v1419_v2  ;;  %v2283_v9 = vpack.c.bf16 %v1452_v5, %v1451_v3 }
 0x1a8   : > { %v1042_v10 = vpop.f32.mrf.mxu0  ;;  %v1170_v11 = vpop.f32.mrf.mxu1 }
 0x1a9   : > { %2311 = vst [vmem:[%s2959_s29 + $0x60] sm:$0xff] %v2203_v8   ;;  %2327 = vst [vmem:[%s2959_s29 + $0xe0] sm:$0xff] %v2283_v9   ;;  %v1421_v16 = vadd.f32 %v2952_v19, %v1042_v10  ;;  %v1453_v17 = vadd.f32 %v2952_v19, %v1170_v11 }
 0x1aa   : > { %v1044_v12 = vpop.f32.mrf.mxu0  ;;  %v1172_v13 = vpop.f32.mrf.mxu1 }
 0x1ac   : > { %v1045_v14 = vpop.f32.mrf.mxu0  ;;  %v1173_v15 = vpop.f32.mrf.mxu1 }
 0x1ad   : > { %v1422_v18 = vadd.f32 %v2952_v19, %v1045_v14  ;;  %v1454_v20 = vadd.f32 %v2952_v19, %v1173_v15 }
 0x1ae   : > { %v1047_v21 = vpop.f32.mrf.mxu0  ;;  %v1175_v22 = vpop.f32.mrf.mxu1 }
 0x1af   : > { %v2208_v23 = vpack.c.bf16 %v1422_v18, %v1421_v16  ;;  %v2288_v24 = vpack.c.bf16 %v1454_v20, %v1453_v17 }
 0x1b0   : > { %v1050_v25 = vpop.f32.mrf.mxu0  ;;  %v1178_v26 = vpop.f32.mrf.mxu1 }
 0x1b1   : > { %2312 = vst [vmem:[%s2959_s29 + $0x68] sm:$0xff] %v2208_v23   ;;  %2328 = vst [vmem:[%s2959_s29 + $0xe8] sm:$0xff] %v2288_v24   ;;  %v1423_v31 = vadd.f32 %v2952_v19, %v1050_v25  ;;  %v1455_v32 = vadd.f32 %v2952_v19, %v1178_v26 }
 0x1b2   : > { %v1052_v27 = vpop.f32.mrf.mxu0  ;;  %v1180_v28 = vpop.f32.mrf.mxu1 }
 0x1b4   : > { %v1053_v29 = vpop.f32.mrf.mxu0  ;;  %v1181_v30 = vpop.f32.mrf.mxu1 }
 0x1b5   : > { %v1424_v33 = vadd.f32 %v2952_v19, %v1053_v29  ;;  %v1456_v34 = vadd.f32 %v2952_v19, %v1181_v30 }
 0x1b6   : > { %v1055_v35 = vpop.f32.mrf.mxu0  ;;  %v1183_v36 = vpop.f32.mrf.mxu1 }
 0x1b7   : > { %v2213_v37 = vpack.c.bf16 %v1424_v33, %v1423_v31  ;;  %v2293_v38 = vpack.c.bf16 %v1456_v34, %v1455_v32 }
 0x1b8   : > { %v1058_v39 = vpop.f32.mrf.mxu0  ;;  %v1186_v40 = vpop.f32.mrf.mxu1 }
 0x1b9   : > { %2313 = vst [vmem:[%s2959_s29 + $0x70] sm:$0xff] %v2213_v37   ;;  %2329 = vst [vmem:[%s2959_s29 + $0xf0] sm:$0xff] %v2293_v38   ;;  %v1425_v45 = vadd.f32 %v2952_v19, %v1058_v39  ;;  %v1457_v46 = vadd.f32 %v2952_v19, %v1186_v40 }
 0x1ba   : > { %v1060_v41 = vpop.f32.mrf.mxu0  ;;  %v1188_v42 = vpop.f32.mrf.mxu1 }
 0x1bc   : > { %v1061_v43 = vpop.f32.mrf.mxu0  ;;  %v1189_v44 = vpop.f32.mrf.mxu1 }
 0x1bd   : > { %v1426_v47 = vadd.f32 %v2952_v19, %v1061_v43  ;;  %v1458_v48 = vadd.f32 %v2952_v19, %v1189_v44 }
 0x1be   : > { %v1063_v49 = vpop.f32.mrf.mxu0  ;;  %v1191_v50 = vpop.f32.mrf.mxu1 }
 0x1bf   : > { %v2218_v51 = vpack.c.bf16 %v1426_v47, %v1425_v45  ;;  %v2298_v52 = vpack.c.bf16 %v1458_v48, %v1457_v46 }
 0x1c1   : > { %2314 = vst [vmem:[%s2959_s29 + $0x78] sm:$0xff] %v2218_v51   ;;  %2330 = vst [vmem:[%s2959_s29 + $0xf8] sm:$0xff] %v2298_v52  }
 0x1c2   : > { %2622 = shalt.err (!%p2619_p3)
}
 0x1c3   : > { %s2623_s26 = scalar_lea.hbm %s3056_s7, 4096  ;;  %s2627_s20 = scalar_lea.hbm %s3110_s3, 16384 }
 0x1c4   : > { %p2624_p5 = scmp.ne.s32.totalorder %s3056_s7, %s2623_s26  ;;  %p2628_p6 = scmp.lt.s32.totalorder %s3056_s7, %s3110_s3 }
 0x1c5   : > { %p2629_p11 = scmp.lt.s32.totalorder %s2627_s20, %s2623_s26 }
 0x1c6   : > { %p2625_p7 = pnand %p2624_p5, %p3121_p4 }
 0x1c7   : > { %p2630_p10 = por %p2629_p11, %p2628_p6 }
 0x1c8   : > { %p2626_p9 = pneg %p2625_p7 }
 0x1ca   : > { %p2631_p1 = pnand %p2630_p10, %p2626_p9 }
 0x1cc   : > { %2634 = shalt.err (!%p2631_p1)
}
 0x1cd   : > { %s2703_s29 = smov 64   ;;  %s2704_s4 = smov 4  }
 0x1ce   : > { %2369 = dma.vmem_to_hbm [thread:$0]  (%p3121_p4), %s3058_s21, 4096, %s3056_s7, %s1780_s15, %s2703_s29, %s2703_s29, %s2704_s4  }
 0x1cf PF: > { %p2386_p8 = scmp.ge.s32.totalorder %s2693_s17, 2  ;;  %s1809_s5 = sand.u32 1, %s2673_s12  }
 0x1d0   : > { %p3122_p12 = scmp.ne.s32.totalorder %s3115_s23, 0  ;;  %s1810_s6 = scalar_lea.sflag [#allocation5], %s1809_s5 }
 0x1d2   : > { %p2380_p13 = pnand %p2386_p8, %p3122_p12 }
 0x1d4   : > { %p2381_p0 = pneg %p2380_p13 }
 0x1d6   : > { %2668 = dma.done.wait (%p2381_p0), %s1810_s6, 4096  }
 0x1d7   : > { %2670 = vsyncadd (%p2381_p0), %s1810_s6, 4294963200  ;;  %s20_s17 = sadd.s32 1, %s2693_s17   ;;  %s3123_s12 = smov %s2677_s13 }
 0x1d8   : > { %p17_p2 = scmp.ge.s32.totalorder %s20_s17, 6   ;;  %s3124_s13 = smov %s2681_s14 }
 0x1d9   : > { %s3125_s14 = smov %s2820_s19  ;;  %s3126_s15 = smov %s2689_s16 }
 0x1da   : > { %s3127_s16 = smov %s3129_s28  ;;  %19 = sbr.rel (!%p17_p2) target bundleno = 7 (0x7), region = 93 }
 0x1df   :  { %1815 = vsyncpa [#allocation4], 1 }
 0x1e0   :  { %1817 = vsyncpa [#allocation4 + $0x1], 1 }
 0x1e1   :  { %1818 = vsyncpa [#allocation7], 1 }
 0x1e2   :  { %1819 = vsyncpa [#allocation5], 1 }
 0x1e3   :  { %1821 = vsyncpa [#allocation5 + $0x1], 1 }

</bundles_post_ra>
